<compile_context>
chip_gen: v5e
topology: v5e:2x2
jax: 0.10.0
libtpu: 0.0.40
codegen_flags: <defaults>
</compile_context>

<pallas_src>
import functools

import jax
import jax.numpy as jnp
from jax.experimental import pallas as pl
from jax.experimental.pallas import tpu as pltpu


def _round_up(x, m):
    return ((x + m - 1) // m) * m


def _gru_combiner_kernel(x1_ref, x2_ref, w_ih_ref, w_hh_ref, b_ref, out_ref):
    """Two-step GRU over one row-tile of tokens.

    x1_ref, x2_ref : (TN, D)   step-1 / step-2 inputs (old_state / agg_messages)
    w_ih_ref       : (D, 3D)   input weights, transposed, gates r|z|n along lanes
    w_hh_ref       : (D, 3D)   hidden weights, transposed, gates r|z|n along lanes
    b_ref          : (2, 3D)   row 0 = [b_ih_r+b_hh_r | b_ih_z+b_hh_z | b_ih_n]
                               row 1 = [      0       |       0       | b_hh_n]
    out_ref        : (TN, D)   final hidden state h2
    """
    tn, d = x1_ref.shape
    x1 = x1_ref[...]
    x2 = x2_ref[...]

    w_ih = w_ih_ref[...]
    w_hh = w_hh_ref[...]

    b = b_ref[...].astype(jnp.float32)
    bx = b[0:1, :]                     # (1, 3D) folded x-side biases
    bh = b[1:2, :]                     # (1, 3D) h-side bias (only n slot nonzero)

    # ---- One MXU burst for both x-side gate pre-activations. ----
    x_both = jnp.concatenate([x1, x2], axis=0)                 # (2*TN, D)
    gi_both = jnp.dot(x_both, w_ih,
                      preferred_element_type=jnp.float32) + bx  # (2*TN, 3D) f32
    gi1 = gi_both[:tn]                                          # (TN, 3D)
    gi2 = gi_both[tn:]                                          # (TN, 3D)

    # ---- Step 1: h0 == 0  =>  gh = b_hh only, z*h0 vanishes. ----
    rz1 = jax.nn.sigmoid(gi1[:, :2 * d])                        # 64-lane EUP pass
    r1 = rz1[:, :d]
    z1 = rz1[:, d:]
    n1 = jnp.tanh(gi1[:, 2 * d:] + r1 * bh[:, 2 * d:])
    h1 = (1.0 - z1) * n1                                        # f32

    # ---- Step 2: full GRU step with h = h1. ----
    gh2 = jnp.dot(h1.astype(x2.dtype), w_hh,
                  preferred_element_type=jnp.float32) + bh      # (TN, 3D) f32
    rz2 = jax.nn.sigmoid(gi2[:, :2 * d] + gh2[:, :2 * d])
    r2 = rz2[:, :d]
    z2 = rz2[:, d:]
    n2 = jnp.tanh(gi2[:, 2 * d:] + r2 * gh2[:, 2 * d:])
    h2 = (1.0 - z2) * n2 + z2 * h1

    out_ref[...] = h2.astype(out_ref.dtype)


def prepare_gru_params(w_ih, w_hh, b_ih, b_hh):
    """One-time parameter prep (keeps slicing/transposes out of the step path).

    w_ih, w_hh: (3D, D) torch-style GRU weights (gate order r, z, n).
    b_ih, b_hh: (3D,)   torch-style GRU biases.
    Returns (w_ih_t (D,3D), w_hh_t (D,3D), b_pack (2,3D)).
    """
    three_d = w_ih.shape[0]
    D = three_d // 3
    w_ih_t = jnp.asarray(w_ih).T                 # (D, 3D), lanes = r|z|n
    w_hh_t = jnp.asarray(w_hh).T                 # (D, 3D)
    b_x = jnp.concatenate([b_ih[:2 * D] + b_hh[:2 * D], b_ih[2 * D:]])
    b_h = jnp.concatenate([jnp.zeros((2 * D,), b_hh.dtype), b_hh[2 * D:]])
    b_pack = jnp.stack([b_x, b_h])               # (2, 3D)
    return w_ih_t, w_hh_t, b_pack


@functools.partial(jax.jit, static_argnames=("tile_n",))
def gru_combiner(old_state, agg_messages, w_ih_t, w_hh_t, b_pack, *,
                 tile_n=2048):
    """old_state, agg_messages: (B, n_nodes, D). Returns (B, n_nodes, D)."""
    B, n_nodes, D = old_state.shape
    N = B * n_nodes

    x1 = old_state.reshape(N, D)
    x2 = agg_messages.reshape(N, D)

    # Row tile: multiple of 8, at most tile_n, and capped at ceil(N/2) so the
    # "parallel" grid axis has >= 2 tiles whenever possible (v7x megacore).
    half = -(-N // 2)
    tn = max(8, min(_round_up(tile_n, 8), _round_up(half, 8)))
    grid = (pl.cdiv(N, tn),)

    row_spec = pl.BlockSpec((tn, D), lambda i: (i, 0))
    w_spec = pl.BlockSpec((D, 3 * D), lambda i: (0, 0))
    b_spec = pl.BlockSpec((2, 3 * D), lambda i: (0, 0))

    out = pl.pallas_call(
        _gru_combiner_kernel,
        out_shape=jax.ShapeDtypeStruct((N, D), old_state.dtype),
        grid_spec=pltpu.PrefetchScalarGridSpec(
            num_scalar_prefetch=0,
            grid=grid,
            in_specs=[row_spec, row_spec, w_spec, w_spec, b_spec],
            out_specs=row_spec,
        ),
        compiler_params=pltpu.CompilerParams(
            dimension_semantics=("parallel",),
            vmem_limit_bytes=32 * 1024 * 1024),
    )(x1, x2, w_ih_t, w_hh_t, b_pack)

    return out.reshape(B, n_nodes, D)


def _reference(old_state, agg_messages, w_ih, w_hh, b_ih, b_hh):
    """Pure-JAX reference of torch.nn.GRU two-step forward (h0 = 0)."""
    B, n_nodes, D = old_state.shape
    x1 = old_state.reshape(-1, D).astype(jnp.float32)
    x2 = agg_messages.reshape(-1, D).astype(jnp.float32)

    def step(x, h):
        gi = x @ w_ih.T + b_ih
        gh = h @ w_hh.T + b_hh
        i_r, i_z, i_n = jnp.split(gi, 3, axis=-1)
        h_r, h_z, h_n = jnp.split(gh, 3, axis=-1)
        r = jax.nn.sigmoid(i_r + h_r)
        z = jax.nn.sigmoid(i_z + h_z)
        n = jnp.tanh(i_n + r * h_n)
        return (1.0 - z) * n + z * h

    h0 = jnp.zeros_like(x1)
    h2 = step(x2, step(x1, h0))
    return h2.reshape(B, n_nodes, D)


if __name__ == "__main__":
    D = 32  # state_dim

    key = jax.random.PRNGKey(0)
    k0, k1, k2, k3, k4, k5, k6, k7 = jax.random.split(key, 8)

    # Deterministic init mimicking torch.nn.GRU U(-1/sqrt(D), 1/sqrt(D)).
    bound = 1.0 / (D ** 0.5)
    w_ih = jax.random.uniform(k0, (3 * D, D), jnp.float32, -bound, bound)
    w_hh = jax.random.uniform(k1, (3 * D, D), jnp.float32, -bound, bound)
    b_ih = jax.random.uniform(k2, (3 * D,), jnp.float32, -bound, bound)
    b_hh = jax.random.uniform(k3, (3 * D,), jnp.float32, -bound, bound)

    # One-time parameter preparation (out of the per-step path).
    w_ih_t, w_hh_t, b_pack = prepare_gru_params(w_ih, w_hh, b_ih, b_hh)

    # Main check: B=2, n_nodes=16.
    old_state = jax.random.normal(k4, (2, 16, D), jnp.float32)
    agg_messages = jax.random.normal(k5, (2, 16, D), jnp.float32)
    out = jax.block_until_ready(
        gru_combiner(old_state, agg_messages, w_ih_t, w_hh_t, b_pack))
    ref = _reference(old_state, agg_messages, w_ih, w_hh, b_ih, b_hh)
    assert out.shape == (2, 16, D)
    assert jnp.allclose(out, ref, atol=1e-5, rtol=1e-5), "mismatch vs reference"

    # Secondary check: non-divisible token count + small tile to exercise the
    # Pallas boundary (padded read / masked write) multi-step grid path.
    old2 = jax.random.normal(k6, (3, 7, D), jnp.float32)
    agg2 = jax.random.normal(k7, (3, 7, D), jnp.float32)
    out2 = jax.block_until_ready(
        gru_combiner(old2, agg2, w_ih_t, w_hh_t, b_pack, tile_n=8))
    ref2 = _reference(old2, agg2, w_ih, w_hh, b_ih, b_hh)
    assert out2.shape == (3, 7, D)
    assert jnp.allclose(out2, ref2, atol=1e-5, rtol=1e-5), "boundary-path mismatch"

    print("KERNEL_OK")
</pallas_src>

<mosaic_0001>
module attributes {stable_mosaic.version = 11 : i64} {
  func.func @_gru_combiner_kernel(%arg0: i32, %arg1: memref<16x32xf32, #tpu.memory_space<vmem>>, %arg2: memref<16x32xf32, #tpu.memory_space<vmem>>, %arg3: memref<32x96xf32, #tpu.memory_space<vmem>>, %arg4: memref<32x96xf32, #tpu.memory_space<vmem>>, %arg5: memref<2x96xf32, #tpu.memory_space<vmem>>, %arg6: memref<16x32xf32, #tpu.memory_space<vmem>>) attributes {dimension_semantics = [#tpu.dimension_semantics<parallel>], iteration_bounds = array<i64: 2>, scalar_prefetch = 0 : i64, scratch_operands = 0 : i64, tpu.core_type = #tpu.core_type<tc>, window_params = [{transform_indices = @transform_0, window_bounds = array<i64: 16, 32>}, {transform_indices = @transform_1, window_bounds = array<i64: 16, 32>}, {pipeline_mode = #tpu.pipeline_mode<synchronous>, transform_indices = @transform_2, window_bounds = array<i64: 32, 96>}, {pipeline_mode = #tpu.pipeline_mode<synchronous>, transform_indices = @transform_3, window_bounds = array<i64: 32, 96>}, {pipeline_mode = #tpu.pipeline_mode<synchronous>, transform_indices = @transform_4, window_bounds = array<i64: 2, 96>}, {transform_indices = @transform_5, window_bounds = array<i64: 16, 32>}]} {
    %c0 = arith.constant 0 : index
    %c0_0 = arith.constant 0 : index
    %0 = vector.load %arg1[%c0, %c0_0] : memref<16x32xf32, #tpu.memory_space<vmem>>, vector<16x32xf32>
    %c0_1 = arith.constant 0 : index
    %c0_2 = arith.constant 0 : index
    %1 = vector.load %arg2[%c0_1, %c0_2] : memref<16x32xf32, #tpu.memory_space<vmem>>, vector<16x32xf32>
    %c0_3 = arith.constant 0 : index
    %c0_4 = arith.constant 0 : index
    %2 = vector.load %arg3[%c0_3, %c0_4] : memref<32x96xf32, #tpu.memory_space<vmem>>, vector<32x96xf32>
    %c0_5 = arith.constant 0 : index
    %c0_6 = arith.constant 0 : index
    %3 = vector.load %arg4[%c0_5, %c0_6] : memref<32x96xf32, #tpu.memory_space<vmem>>, vector<32x96xf32>
    %c0_7 = arith.constant 0 : index
    %c0_8 = arith.constant 0 : index
    %4 = vector.load %arg5[%c0_7, %c0_8] : memref<2x96xf32, #tpu.memory_space<vmem>>, vector<2x96xf32>
    %5 = vector.extract_strided_slice %4 {offsets = [0, 0], sizes = [1, 96], strides = [1, 1]} : vector<2x96xf32> to vector<1x96xf32>
    %6 = vector.extract_strided_slice %4 {offsets = [1, 0], sizes = [1, 96], strides = [1, 1]} : vector<2x96xf32> to vector<1x96xf32>
    %7 = tpu.concatenate %0, %1 in 0 : vector<16x32xf32>, vector<16x32xf32> -> vector<32x32xf32>
    %cst = arith.constant dense<0.000000e+00> : vector<32x96xf32>
    %8 = tpu.matmul %7, %2, %cst {dimension_numbers = #tpu.dot_dimension_numbers<[1], [0], [0], [1], [0, 0, 1, 1], [], []>} : vector<32x32xf32>, vector<32x96xf32>, vector<32x96xf32> -> vector<32x96xf32>
    %9 = vector.broadcast %5 : vector<1x96xf32> to vector<32x96xf32>
    %10 = arith.addf %8, %9 : vector<32x96xf32>
    %11 = vector.extract_strided_slice %10 {offsets = [0, 0], sizes = [16, 96], strides = [1, 1]} : vector<32x96xf32> to vector<16x96xf32>
    %12 = vector.extract_strided_slice %10 {offsets = [16, 0], sizes = [16, 96], strides = [1, 1]} : vector<32x96xf32> to vector<16x96xf32>
    %13 = vector.extract_strided_slice %11 {offsets = [0, 0], sizes = [16, 64], strides = [1, 1]} : vector<16x96xf32> to vector<16x64xf32>
    %14 = arith.negf %13 : vector<16x64xf32>
    %15 = math.exp %14 : vector<16x64xf32>
    %cst_9 = arith.constant 1.000000e+00 : f32
    %16 = vector.broadcast %cst_9 : f32 to vector<16x64xf32>
    %17 = arith.addf %16, %15 : vector<16x64xf32>
    %18 = arith.divf %16, %17 : vector<16x64xf32>
    %19 = vector.extract_strided_slice %18 {offsets = [0, 0], sizes = [16, 32], strides = [1, 1]} : vector<16x64xf32> to vector<16x32xf32>
    %20 = vector.extract_strided_slice %18 {offsets = [0, 32], sizes = [16, 32], strides = [1, 1]} : vector<16x64xf32> to vector<16x32xf32>
    %21 = vector.extract_strided_slice %11 {offsets = [0, 64], sizes = [16, 32], strides = [1, 1]} : vector<16x96xf32> to vector<16x32xf32>
    %22 = vector.extract_strided_slice %6 {offsets = [0, 64], sizes = [1, 32], strides = [1, 1]} : vector<1x96xf32> to vector<1x32xf32>
    %23 = vector.broadcast %22 : vector<1x32xf32> to vector<16x32xf32>
    %24 = arith.mulf %19, %23 : vector<16x32xf32>
    %25 = arith.addf %21, %24 : vector<16x32xf32>
    %26 = math.tanh %25 : vector<16x32xf32>
    %cst_10 = arith.constant 1.000000e+00 : f32
    %27 = vector.broadcast %cst_10 : f32 to vector<16x32xf32>
    %28 = arith.subf %27, %20 : vector<16x32xf32>
    %29 = arith.mulf %28, %26 : vector<16x32xf32>
    %cst_11 = arith.constant dense<0.000000e+00> : vector<16x96xf32>
    %30 = tpu.matmul %29, %3, %cst_11 {dimension_numbers = #tpu.dot_dimension_numbers<[1], [0], [0], [1], [0, 0, 1, 1], [], []>} : vector<16x32xf32>, vector<32x96xf32>, vector<16x96xf32> -> vector<16x96xf32>
    %31 = vector.broadcast %6 : vector<1x96xf32> to vector<16x96xf32>
    %32 = arith.addf %30, %31 : vector<16x96xf32>
    %33 = vector.extract_strided_slice %12 {offsets = [0, 0], sizes = [16, 64], strides = [1, 1]} : vector<16x96xf32> to vector<16x64xf32>
    %34 = vector.extract_strided_slice %32 {offsets = [0, 0], sizes = [16, 64], strides = [1, 1]} : vector<16x96xf32> to vector<16x64xf32>
    %35 = arith.addf %33, %34 : vector<16x64xf32>
    %36 = arith.negf %35 : vector<16x64xf32>
    %37 = math.exp %36 : vector<16x64xf32>
    %cst_12 = arith.constant 1.000000e+00 : f32
    %38 = vector.broadcast %cst_12 : f32 to vector<16x64xf32>
    %39 = arith.addf %38, %37 : vector<16x64xf32>
    %40 = arith.divf %38, %39 : vector<16x64xf32>
    %41 = vector.extract_strided_slice %40 {offsets = [0, 0], sizes = [16, 32], strides = [1, 1]} : vector<16x64xf32> to vector<16x32xf32>
    %42 = vector.extract_strided_slice %40 {offsets = [0, 32], sizes = [16, 32], strides = [1, 1]} : vector<16x64xf32> to vector<16x32xf32>
    %43 = vector.extract_strided_slice %12 {offsets = [0, 64], sizes = [16, 32], strides = [1, 1]} : vector<16x96xf32> to vector<16x32xf32>
    %44 = vector.extract_strided_slice %32 {offsets = [0, 64], sizes = [16, 32], strides = [1, 1]} : vector<16x96xf32> to vector<16x32xf32>
    %45 = arith.mulf %41, %44 : vector<16x32xf32>
    %46 = arith.addf %43, %45 : vector<16x32xf32>
    %47 = math.tanh %46 : vector<16x32xf32>
    %cst_13 = arith.constant 1.000000e+00 : f32
    %48 = vector.broadcast %cst_13 : f32 to vector<16x32xf32>
    %49 = arith.subf %48, %42 : vector<16x32xf32>
    %50 = arith.mulf %49, %47 : vector<16x32xf32>
    %51 = arith.mulf %42, %29 : vector<16x32xf32>
    %52 = arith.addf %50, %51 : vector<16x32xf32>
    %c0_14 = arith.constant 0 : index
    %c0_15 = arith.constant 0 : index
    %53 = vector.load %arg6[%c0_14, %c0_15] : memref<16x32xf32, #tpu.memory_space<vmem>>, vector<16x32xf32>
    tpu.vector_store %arg6[%c0_14, %c0_15], %52 {strides = array<i32>} : memref<16x32xf32, #tpu.memory_space<vmem>>, vector<16x32xf32>,
    return
  }
  func.func @transform_0(%arg0: i32) -> (i32, i32) {
    %c0_i32 = arith.constant 0 : i32
    %c0_i32_0 = arith.constant 0 : i32
    return %arg0, %c0_i32 : i32, i32
  }
  func.func @transform_1(%arg0: i32) -> (i32, i32) {
    %c0_i32 = arith.constant 0 : i32
    %c0_i32_0 = arith.constant 0 : i32
    return %arg0, %c0_i32 : i32, i32
  }
  func.func @transform_2(%arg0: i32) -> (i32, i32) {
    %c0_i32 = arith.constant 0 : i32
    %c0_i32_0 = arith.constant 0 : i32
    %c0_i32_1 = arith.constant 0 : i32
    return %c0_i32, %c0_i32_0 : i32, i32
  }
  func.func @transform_3(%arg0: i32) -> (i32, i32) {
    %c0_i32 = arith.constant 0 : i32
    %c0_i32_0 = arith.constant 0 : i32
    %c0_i32_1 = arith.constant 0 : i32
    return %c0_i32, %c0_i32_0 : i32, i32
  }
  func.func @transform_4(%arg0: i32) -> (i32, i32) {
    %c0_i32 = arith.constant 0 : i32
    %c0_i32_0 = arith.constant 0 : i32
    %c0_i32_1 = arith.constant 0 : i32
    return %c0_i32, %c0_i32_0 : i32, i32
  }
  func.func @transform_5(%arg0: i32) -> (i32, i32) {
    %c0_i32 = arith.constant 0 : i32
    %c0_i32_0 = arith.constant 0 : i32
    return %arg0, %c0_i32 : i32, i32
  }
}

</mosaic_0001>

<bundles_post_ra>
// kernel: gru_combiner.1
= control target key start
LH: loop header
LB: loop body
LE: loop exit
PB: predicated region body
PF: predicated region fallthrough
CT: control target
= control target key end

     0   :  { %s1321_s0 = inlined_call_operand.hbm [shape: f32[32,32], index: 0, kind: input, shape index: {}]   ;;  %s1322_s1 = inlined_call_operand.hbm [shape: f32[32,32], index: 1, kind: input, shape index: {}]   ;;  %s1323_s2 = inlined_call_operand.hbm [shape: f32[32,96], index: 2, kind: input, shape index: {}]   ;;  %s1324_s3 = inlined_call_operand.hbm [shape: f32[32,96], index: 3, kind: input, shape index: {}]   ;;  %s1325_s4 = inlined_call_operand.vmem [shape: f32[2,96], index: 4, kind: input, shape index: {}]   ;;  %s1326_s5 = inlined_call_operand.hbm [shape: f32[32,32], index: 5, kind: output, shape index: {}]  }
   0x1   :  { %1331 = sst [smem:[#allocation17_spill]] %s1321_s0 }
   0x2   :  { %1332 = sst [smem:[#allocation18_spill]] %s1323_s2 }
   0x3   :  { %1333 = sst [smem:[#allocation19_spill]] %s1324_s3 }
   0x4   :  { %10 = vsyncpa [#allocation3], 0 }
   0x5   :  { %12 = vsyncpa [#allocation3 + $0x1], 0 }
   0x6   :  { %13 = vsyncpa [#allocation6], 0 }
   0x7   :  { %15 = vsyncpa [#allocation6 + $0x1], 0 }
   0x8   :  { %16 = vsyncpa [#allocation9], 0 }
   0x9   :  { %17 = vsyncpa [#allocation4], 0 }
   0xa   :  { %19 = vsyncpa [#allocation4 + $0x1], 0  ;;  %s1083_s18 = smov 0   ;;  %s1085_s19 = smov 0  }
   0xb   :  { %s1087_s20 = smov 0   ;;  %s1089_s21 = smov 0  }
   0xc LB: > { %s1104_s22 = sadd.s32 4294967295, %s1043_s21   ;;  %s700_s23 = sadd.s32 4294967294, %s1043_s21   ;;  %s1043_s21 = sphi %s1089_s21, %s1350_s21   ;;  %s1039_s20 = sphi %s1087_s20, %s1349_s20   ;;  %s1035_s19 = sphi %s1085_s19, %s1348_s19   ;;  %s1031_s18 = sphi %s1083_s18, %s1347_s18  }
   0xd   : > { %p45_p0 = scmp.ne.s32.totalorder %s1035_s19, %s1031_s18  ;;  %p46_p1 = scmp.eq.s32.totalorder %s1104_s22, 0 }
   0xe   : > { %p158_p2 = scmp.eq.s32.totalorder %s1104_s22, 1  ;;  %p164_p3 = scmp.eq.s32.totalorder %s700_s23, 1 }
   0xf   : > { %p1113_p4 = por %p46_p1, %p45_p0  ;;  %p701_p5 = scmp.ge.s32.totalorder %s1043_s21, 1 }
  0x10   : > { %p1118_p6 = por %p164_p3, %p45_p0  ;;  %p171_p7 = scmp.lt.s32.totalorder %s1043_s21, 3 }
  0x11   : > { %s1336_s2 = sld [smem:[#allocation18_spill]]  ;;  %s1045_s30 = smov [#allocation7]  }
  0x12   : > { %p1126_p8 = pnand %p701_p5, %p171_p7  ;;  %s184_s6 = sshll.u32 %s1045_s30, 4  ;;  %s185_s6 = int_to_ptr.vmem [resolvable:$true] %s184_s6 }
  0x13   : > { %s1338_s3 = sld [smem:[#allocation19_spill]]  ;;  %s1327_s10 = smov 128  }
  0x14   : > { %p757_p9 = pneg %p1126_p8  ;;  %s1329_s11 = smov 8  }
  0x15   : > { %s1048_s12 = smov [#allocation8]   ;;  %s1145_s14 = sadd.s32 1, %s1043_s21  }
  0x16   : > { %p758_p10 = pnand %p757_p9, %p46_p1  ;;  %s198_s13 = sshll.u32 %s1048_s12, 4  ;;  %s199_s13 = int_to_ptr.vmem [resolvable:$true] %s198_s13 }
  0x17   : > { %s182_s28 = sshll.u32 %s1336_s2, 4  ;;  %s32_s15 = sadd.s32 1, %s1039_s20  ;;  %s183_s28 = int_to_ptr.hbm [resolvable:$true] %s182_s28 }
  0x18   : > { %760 = dma.hbm_to_vmem [thread:$0]  (!%p758_p10), %s183_s28, 512, %s185_s6, [#allocation6], %s1327_s10, %s1327_s10, %s1329_s11  }
  0x19   : > { %s196_s9 = sshll.u32 %s1338_s3, 4  ;;  %s29_s16 = ssub.s32 %s1043_s21, %s1145_s14  ;;  %s197_s9 = int_to_ptr.hbm [resolvable:$true] %s196_s9 }
  0x1a   : > { %763 = dma.hbm_to_vmem [thread:$0]  (!%p758_p10), %s197_s9, 512, %s199_s13, [#allocation9], %s1327_s10, %s1327_s10, %s1329_s11  }
  0x1b   : > { %p39_p12 = scmp.ne.s32.totalorder %s1039_s20, %s1035_s19  ;;  %p30_p13 = scmp.eq.s32.totalorder %s29_s16, 0 }
  0x1c   : > { %p40_p0 = scmp.eq.s32.totalorder %s1043_s21, 0  ;;  %p777_p5 = scmp.lt.s32.totalorder %s1043_s21, 2 }
  0x1d   : > { %p1155_p3 = por %p158_p2, %p39_p12  ;;  %s215_s26 = sand.u32 1, %s1039_s20  }
  0x1e   : > { %s1161_s23 = scalar_select %p30_p13, %s1039_s20, %s32_s15  }
  0x1f   : > { %p41_p7 = por %p40_p0, %p39_p12  ;;  %s1164_s27 = sshll.u32 %s215_s26, 4 }
  0x20   : > { %1340 = sst [smem:[#allocation16_spill]] %s1161_s23  ;;  %s732_s28 = sshll.u32 %s1043_s21, 4 }
  0x21   : > { %s1341_s0 = sld [smem:[#allocation17_spill]]  ;;  %s219_s8 = scalar_lea.vmem [#allocation2], %s1164_s27 }
  0x22   : > { %s227_s9 = sshll.u32 %s219_s8, 4  ;;  %p1171_p2 = pnand %p777_p5, %p41_p7  ;;  %s228_s9 = int_to_ptr.vmem [resolvable:$true] %s227_s9 }
  0x23   : > { %s246_s10 = scalar_lea.hbm %s1322_s1, %s732_s28  ;;  %s216_s2 = scalar_lea.sflag [#allocation3], %s215_s26 }
  0x24   : > { %s247_s11 = sshll.u32 %s246_s10, 4  ;;  %p909_p10 = pneg %p1171_p2  ;;  %s248_s11 = int_to_ptr.hbm [resolvable:$true] %s247_s11 }
  0x27   : > { %s224_s7 = scalar_lea.hbm %s1341_s0, %s732_s28  ;;  %s912_s8 = scalar_lea.hbm %s1341_s0, 32 }
  0x28   : > { %s225_s12 = sshll.u32 %s224_s7, 4  ;;  %s226_s12 = int_to_ptr.hbm [resolvable:$true] %s225_s12 }
  0x29   : > { %s905_s3 = sshra.s32 %s226_s12, 4  ;;  %s906_s3 = int_to_ptr.hbm [resolvable:$true] %s905_s3 }
  0x2a   : > { %s907_s30 = scalar_lea.hbm %s906_s3, 16  ;;  %p913_p0 = scmp.lt.s32.totalorder %s906_s3, %s1341_s0 }
  0x2b   : > { %p908_p9 = scmp.ne.s32.totalorder %s906_s3, %s907_s30  ;;  %p914_p5 = scmp.lt.s32.totalorder %s912_s8, %s907_s30 }
  0x2d   : > { %p910_p12 = pnand %p909_p10, %p908_p9  ;;  %p915_p7 = por %p914_p5, %p913_p0 }
  0x2f   : > { %p911_p13 = pneg %p910_p12 }
  0x31   : > { %p916_p11 = pnand %p915_p7, %p911_p13 }
  0x33   : > { %919 = shalt.err (!%p916_p11)
}
  0x34   : > { %s1343_s10 = smov 8   ;;  %s1344_s26 = smov 128  }
  0x35   : > { %767 = dma.hbm_to_vmem [thread:$0]  (!%p1171_p2), %s226_s12, 256, %s228_s9, %s216_s2, %s1344_s26, %s1344_s26, %s1343_s10  }
  0x36   : > { %s241_s28 = scalar_lea.vmem [#allocation5], %s1164_s27  ;;  %s237_s7 = sand.u32 1, %s1043_s21  }
  0x37   : > { %s249_s6 = sshll.u32 %s241_s28, 4  ;;  %s238_s15 = scalar_lea.sflag [#allocation6], %s237_s7  ;;  %s250_s6 = int_to_ptr.vmem [resolvable:$true] %s249_s6 }
  0x38   : > { %s935_s3 = sshra.s32 %s248_s11, 4  ;;  %s942_s0 = scalar_lea.hbm %s1322_s1, 32  ;;  %s936_s3 = int_to_ptr.hbm [resolvable:$true] %s935_s3 }
  0x39   : > { %s937_s30 = scalar_lea.hbm %s936_s3, 16  ;;  %p943_p13 = scmp.lt.s32.totalorder %s936_s3, %s1322_s1 }
  0x3a   : > { %p938_p9 = scmp.ne.s32.totalorder %s936_s3, %s937_s30  ;;  %p944_p0 = scmp.lt.s32.totalorder %s942_s0, %s937_s30 }
  0x3c   : > { %p940_p11 = pnand %p938_p9, %p909_p10  ;;  %p945_p5 = por %p944_p0, %p943_p13 }
  0x3e   : > { %p941_p12 = pneg %p940_p11 }
  0x40   : > { %p946_p7 = pnand %p945_p5, %p941_p12 }
  0x42   : > { %949 = shalt.err (!%p946_p7)
}
  0x43   : > { %770 = dma.hbm_to_vmem [thread:$0]  (!%p1171_p2), %s248_s11, 256, %s250_s6, %s238_s15, %s1344_s26, %s1344_s26, %s1343_s10  }
  0x44   : > { %261 = sbr.rel (%p1126_p8) target bundleno = 1162 (0x48a), region = 40  ;;  %s1213_s27 = sand.u32 (!%p1126_p8), 1, %s1035_s19  }
  0x45   : > { %s1216_s23 = sshll.u32 (!%p1126_p8), %s1213_s27, 4  ;;  %s264_s0 = scalar_lea.sflag (!%p1126_p8), [#allocation3], %s1213_s27 }
  0x46   : > { %s267_s9 = scalar_lea.vmem (!%p1126_p8), [#allocation2], %s1216_s23 }
  0x49   : > { %1010 = dma.done.wait (%p1113_p4), %s264_s0, 256  }
  0x4a   : > { %1012 = vsyncadd (%p1113_p4), %s264_s0, 4294967040  ;;  %s273_s29 = sand.u32 1, %s1104_s22   ;;  %s277_s12 = scalar_lea.vmem [#allocation5], %s1216_s23 }
  0x4b   : > { %s274_s11 = scalar_lea.sflag [#allocation6], %s273_s29 }
  0x4c   : > { %1014 = dma.done.wait (%p1113_p4), %s274_s11, 256  }
  0x4d   : > { %1016 = vsyncadd (%p1113_p4), %s274_s11, 4294967040 }
  0x4e   : > { %1018 = dma.done.wait (%p46_p1), [#allocation6], 512  }
  0x4f   : > { %1020 = vsyncadd (%p46_p1), [#allocation6], 4294966784 }
  0x50   : > { %1022 = dma.done.wait (%p46_p1), [#allocation9], 512  }
  0x51   : > { %1024 = vsyncadd (%p46_p1), [#allocation9], 4294966784  ;;  %v330_v0 = vld [vmem:[#allocation7 + $0x18] sm:$0xff]  ;;  %v329_v1 = vld [vmem:[#allocation7 + $0x10] sm:$0xff]  ;;  %vm337_vm0 = vcmask 261120   ;;  %s1049_s10 = smov 64  }
  0x52   : > { %362 = vmatpush.msra.mxu0 %v330_v0  ;;  %735 = vmatpush.msra.mxu2 %v330_v0  ;;  %v328_v2 = vld [vmem:[#allocation7 + $0x8] sm:$0xff]  ;;  %v335_v3 = vld [vmem:[%s1325_s4] sm:$0x3]  ;;  %s1050_s26 = smov 96   ;;  %v334_v48 = vld [vmem:[#allocation8 + $0x18] sm:$0xff]  ;;  %s319_s28 = scalar_lea.vmem [#allocation10], %s1216_s23 }
  0x53   : > { %736 = vmatpush.msra.mxu3 %v330_v0  ;;  %v1241_v4 = vperm.slane %v335_v3, 1  ;;  %v327_v5 = vld [vmem:[#allocation7] sm:$0xff]  ;;  %v324_v7 = vld [vmem:[%s267_s9 + $0x8] sm:$0xff]  ;;  %v1247_v8 = vperm.slane %v335_v3, 0  ;;  %v333_v50 = vld [vmem:[#allocation8 + $0x10] sm:$0xff]  ;;  %470 = vmatpush.msra.mxu1 %v334_v48  ;;  %s734_s6 = sshll.u32 %s1104_s22, 4 }
  0x54   : > { %363 = vmatpush.msra.mxu0 %v329_v1  ;;  %737 = vmatpush.msra.mxu2 %v329_v1  ;;  %v323_v6 = vld [vmem:[%s267_s9] sm:$0xff]  ;;  %v332_v51 = vld [vmem:[#allocation8 + $0x8] sm:$0xff]  ;;  %s581_s3 = scalar_lea.hbm %s1326_s5, %s734_s6  ;;  %s582_s30 = sshll.u32 %s319_s28, 4  ;;  %s583_s30 = int_to_ptr.vmem [resolvable:$true] %s582_s30 }
  0x55   : > { %738 = vmatpush.msra.mxu3 %v329_v1  ;;  %419 = vrot.lane.b32.xlu0 %v1241_v4, %s1049_s10  ;;  %v325_v49 = vld [vmem:[%s277_s12] sm:$0xff]  ;;  %v326_v59 = vld [vmem:[%s277_s12 + $0x8] sm:$0xff]  ;;  %s584_s8 = sshll.u32 %s581_s3, 4  ;;  %s570_s16 = scalar_lea.sflag [#allocation4], %s1213_s27  ;;  %s585_s8 = int_to_ptr.hbm [resolvable:$true] %s584_s8 }
  0x56   : > { %364 = vmatpush.msra.mxu0 %v328_v2  ;;  %739 = vmatpush.msra.mxu2 %v328_v2  ;;  %v331_v52 = vld [vmem:[#allocation8] sm:$0xff]  ;;  %s979_s2 = sshra.s32 %s585_s8, 4  ;;  %s985_s9 = scalar_lea.hbm %s1326_s5, 32  ;;  %s980_s2 = int_to_ptr.hbm [resolvable:$true] %s979_s2 }
  0x57   : > { %740 = vmatpush.msra.mxu3 %v328_v2  ;;  %471 = vmatpush.msra.mxu1 %v333_v50  ;;  %s981_s0 = scalar_lea.hbm %s980_s2, 16  ;;  %p986_p2 = scmp.lt.s32.totalorder %s980_s2, %s1326_s5 }
  0x58   : > { %365 = vmatpush.msra.mxu0 %v327_v5  ;;  %741 = vmatpush.msra.mxu2 %v327_v5  ;;  %p982_p1 = scmp.ne.s32.totalorder %s980_s2, %s981_s0  ;;  %p987_p10 = scmp.lt.s32.totalorder %s985_s9, %s981_s0 }
  0x59   : > { %717 = vmatmul.msk.f32.vlgmr.msra.gmra.mxu0 %vm337_vm0, %v323_v6  ;;  %718 = vmatmul.msk.f32.vlgmr.msra.gmra.mxu2 %vm337_vm0, %v324_v7 }
  0x5a   : > { %742 = vmatpush.msra.mxu3 %v327_v5  ;;  %472 = vmatpush.msra.mxu1 %v332_v51  ;;  %p983_p4 = pnand %p982_p1, %p1155_p3  ;;  %p988_p9 = por %p987_p10, %p986_p2 }
  0x5b   : > { %720 = vmatmul.msk.f32.vlgmr.msra.gmra.mxu3 %vm337_vm0, %v326_v59 }
  0x5c   : > { %473 = vmatpush.msra.mxu1 %v331_v52  ;;  %p984_p8 = pneg %p983_p4 }
  0x5e   : > { %p989_p11 = pnand %p988_p9, %p984_p8 }
  0x61   : > { %719 = vmatmul.msk.f32.gmra.mxu2 %vm337_vm0, %v325_v49 }
  0xc7   : > { %v420_v28 = vpop.permute.xlu0 %419 }
  0xd6   : > { %v367_v9 = vpop.f32.mrf.mxu0 }
  0xd7   : > { %v368_v10 = vadd.f32 %v367_v9, %v1247_v8 }
  0xd9   : > { %v721_v11 = vmul.f32 -1.442695, %v368_v10 }
  0xdb   : > { %821 = vpow2.f32 %v721_v11 }
  0xdc   : > { %v370_v12 = vpop.f32.mrf.mxu2 }
  0xdd   : > { %v371_v13 = vadd.f32 %v370_v12, %v1247_v8 }
  0xde   : > { %v376_v2 = vpop.f32.mrf.mxu3 }
  0xdf   : > { %v722_v14 = vmul.f32 -1.442695, %v371_v13  ;;  %v377_v3 = vadd.f32 %v376_v2, %v1247_v8 }
  0xe1   : > { %v822_v15 = vpop.eup %821  ;;  %823 = vpow2.f32 %v722_v14 }
  0xe2   : > { %v385_v16 = vadd.f32 1.0, %v822_v15 }
  0xe4   : > { %825 = vrcp.f32 %v385_v16  ;;  %v396_v22 = vand.u32 2147483647, %v385_v16  ;;  %v398_v23 = vand.u32 2147483648, %v385_v16  ;;  %vm392_vm2 = vweird.f32 %v385_v16  ;;  %v373_v7 = vpop.f32.mrf.mxu2 }
  0xe5   : > { %v374_v9 = vadd.f32 %v373_v7, %v1247_v8 }
  0xe6   : > { %vm397_vm4 = vcmp.eq.f32.partialorder %v396_v22, 8.507059e+37  ;;  %v399_v29 = vor.u32 1.1754944e-38, %v398_v23 }
  0xe7   : > { %v824_v17 = vpop.eup %823 }
  0xe8   : > { %v386_v18 = vadd.f32 1.0, %v824_v17 }
  0xea   : > { %v826_v19 = vpop.eup %825  ;;  %827 = vrcp.f32 %v386_v18  ;;  %vm407_vm5 = vweird.f32 %v386_v18  ;;  %v413_v30 = vand.u32 2147483648, %v386_v18  ;;  %v411_v33 = vand.u32 2147483647, %v386_v18 }
  0xeb   : > { %v388_v20 = vmul.f32 %v826_v19, %v385_v16  ;;  %vm393_vm1 = vweird.f32 %v826_v19 }
  0xec   : > { %vm394_vm3 = vmor %vm392_vm2, %vm393_vm1  ;;  %v414_v37 = vor.u32 1.1754944e-38, %v413_v30  ;;  %vm412_vm8 = vcmp.eq.f32.partialorder %v411_v33, 8.507059e+37 }
  0xed   : > { %v389_v21 = vsub.f32 1.0, %v388_v20 }
  0xef   : > { %v390_v24 = vmul.f32 %v826_v19, %v389_v21 }
  0xf0   : > { %v828_v25 = vpop.eup %827 }
  0xf1   : > { %v391_v26 = vadd.f32 %v826_v19, %v390_v24  ;;  %v403_v27 = vmul.f32 %v828_v25, %v386_v18  ;;  %vm408_vm6 = vweird.f32 %v828_v25 }
  0xf2   : > { %vm409_vm7 = vmor %vm407_vm5, %vm408_vm6 }
  0xf3   : > { %v395_v31 = vsel %vm394_vm3, %v826_v19, %v391_v26  ;;  %v404_v32 = vsub.f32 1.0, %v403_v27 }
  0xf4   : > { %v400_v34 = vsel %vm397_vm4, %v399_v29, %v395_v31 }
  0xf5   : > { %v422_v35 = vmul.f32 %v420_v28, %v400_v34  ;;  %v405_v36 = vmul.f32 %v828_v25, %v404_v32  ;;  %v436_v56 = vsub.f32 1.0, %v400_v34 }
  0xf7   : > { %426 = vrot.lane.b32.xlu0 %v422_v35, %s1049_s10  ;;  %v406_v38 = vadd.f32 %v828_v25, %v405_v36 }
  0xf9   : > { %v410_v39 = vsel %vm409_vm7, %v828_v25, %v406_v38 }
  0xfa   : > { %v415_v40 = vsel %vm412_vm8, %v414_v37, %v410_v39 }
  0xfb   : > { %v423_v41 = vmul.f32 %v420_v28, %v415_v40  ;;  %v437_v53 = vsub.f32 1.0, %v415_v40 }
  0xfd   : > { %428 = vrot.lane.b32.xlu1 %v423_v41, %s1049_s10 }
 0x169   : > { %v427_v42 = vpop.permute.xlu0 %426 }
 0x16a   : > { %v432_v43 = vadd.f32 %v427_v42, %v368_v10 }
 0x16c   : > { %829 = vtanh.f32 %v432_v43 }
 0x16f   : > { %v429_v44 = vpop.permute.xlu1 %428 }
 0x170   : > { %v433_v45 = vadd.f32 %v429_v44, %v371_v13 }
 0x172   : > { %v830_v46 = vpop.eup %829  ;;  %831 = vtanh.f32 %v433_v45 }
 0x173   : > { %440 = vrot.lane.b32.xlu1 %v830_v46, %s1050_s26 }
 0x178   : > { %v832_v47 = vpop.eup %831 }
 0x179   : > { %442 = vrot.lane.b32.xlu2 %v832_v47, %s1050_s26 }
 0x1d3   : > { %v443_v54 = vpop.permute.xlu2 %442 }
 0x1d4   : > { %v1258_v55 = vmul.f32 %v443_v54, %v437_v53 }
 0x1d6   : > { %452 = vrot.lane.b32.xlu0 %v1258_v55, %s1050_s26 }
 0x1e5   : > { %v441_v57 = vpop.permute.xlu1 %440 }
 0x1e6   : > { %v1262_v58 = vmul.f32 %v441_v57, %v436_v56 }
 0x1e8   : > { %450 = vrot.lane.b32.xlu2 %v1262_v58, %s1050_s26 }
 0x242   : > { %v451_v60 = vpop.permute.xlu2 %450 }
 0x243   : > { %723 = vmatmul.msk.f32.vlgmr.msra.gmra.mxu1 %vm337_vm0, %v451_v60 }
 0x248   : > { %v453_v61 = vpop.permute.xlu0 %452 }
 0x24b   : > { %724 = vmatmul.msk.f32.gmra.mxu1 %vm337_vm0, %v453_v61 }
 0x2c0   : > { %v475_v62 = vpop.f32.mrf.mxu1 }
 0x2c1   : > { %v476_v63 = vadd.f32 %v475_v62, %v1241_v4 }
 0x2c3   : > { %523 = vrot.lane.b32.xlu1 %v476_v63, %s1049_s10  ;;  %v481_v11 = vadd.f32 %v476_v63, %v374_v9 }
 0x2c5   : > { %v725_v13 = vmul.f32 -1.442695, %v481_v11 }
 0x2c8   : > { %v478_v0 = vpop.f32.mrf.mxu1 }
 0x2c9   : > { %v479_v1 = vadd.f32 %v478_v0, %v1241_v4 }
 0x2cb   : > { %525 = vrot.lane.b32.xlu2 %v479_v1, %s1049_s10  ;;  %v482_v5 = vadd.f32 %v479_v1, %v377_v3 }
 0x2cd   : > { %v726_v6 = vmul.f32 -1.442695, %v482_v5 }
 0x2cf   : > { %833 = vpow2.f32 %v726_v6 }
 0x2d5   : > { %v834_v10 = vpop.eup %833 }
 0x2d6   : > { %v490_v12 = vadd.f32 1.0, %v834_v10 }
 0x2d8   : > { %835 = vrcp.f32 %v490_v12  ;;  %v517_v21 = vand.u32 2147483648, %v490_v12  ;;  %vm511_vm10 = vweird.f32 %v490_v12  ;;  %v515_v22 = vand.u32 2147483647, %v490_v12 }
 0x2d9   : > { %837 = vpow2.f32 %v725_v13 }
 0x2da   : > { %v518_v24 = vor.u32 1.1754944e-38, %v517_v21  ;;  %vm516_vm12 = vcmp.eq.f32.partialorder %v515_v22, 8.507059e+37 }
 0x2de   : > { %v836_v14 = vpop.eup %835 }
 0x2df   : > { %v838_v15 = vpop.eup %837  ;;  %v507_v4 = vmul.f32 %v836_v14, %v490_v12  ;;  %vm512_vm9 = vweird.f32 %v836_v14 }
 0x2e0   : > { %v489_v16 = vadd.f32 1.0, %v838_v15  ;;  %vm513_vm11 = vmor %vm511_vm10, %vm512_vm9 }
 0x2e1   : > { %v508_v17 = vsub.f32 1.0, %v507_v4 }
 0x2e2   : > { %839 = vrcp.f32 %v489_v16  ;;  %v502_v31 = vand.u32 2147483648, %v489_v16  ;;  %vm496_vm14 = vweird.f32 %v489_v16  ;;  %v500_v32 = vand.u32 2147483647, %v489_v16 }
 0x2e3   : > { %v509_v18 = vmul.f32 %v836_v14, %v508_v17 }
 0x2e4   : > { %v503_v34 = vor.u32 1.1754944e-38, %v502_v31  ;;  %vm501_vm1 = vcmp.eq.f32.partialorder %v500_v32, 8.507059e+37 }
 0x2e5   : > { %v510_v19 = vadd.f32 %v836_v14, %v509_v18 }
 0x2e7   : > { %v514_v8 = vsel %vm513_vm11, %v836_v14, %v510_v19 }
 0x2e8   : > { %v840_v20 = vpop.eup %839  ;;  %v519_v26 = vsel %vm516_vm12, %v518_v24, %v514_v8 }
 0x2e9   : > { %v492_v23 = vmul.f32 %v840_v20, %v489_v16  ;;  %vm497_vm13 = vweird.f32 %v840_v20  ;;  %v544_v49 = vsub.f32 1.0, %v519_v26  ;;  %v556_v51 = vmul.f32 %v519_v26, %v1258_v55 }
 0x2ea   : > { %vm498_vm15 = vmor %vm496_vm14, %vm497_vm13 }
 0x2eb   : > { %v493_v28 = vsub.f32 1.0, %v492_v23 }
 0x2ed   : > { %v494_v29 = vmul.f32 %v840_v20, %v493_v28 }
 0x2ef   : > { %v495_v30 = vadd.f32 %v840_v20, %v494_v29 }
 0x2f1   : > { %v499_v33 = vsel %vm498_vm15, %v840_v20, %v495_v30 }
 0x2f2   : > { %v504_v36 = vsel %vm501_vm1, %v503_v34, %v499_v33 }
 0x2f3   : > { %v543_v44 = vsub.f32 1.0, %v504_v36  ;;  %v555_v46 = vmul.f32 %v504_v36, %v1262_v58 }
 0x325   : > { %v526_v25 = vpop.permute.xlu2 %525 }
 0x326   : > { %v530_v27 = vmul.f32 %v526_v25, %v519_v26 }
 0x328   : > { %535 = vrot.lane.b32.xlu1 %v530_v27, %s1049_s10 }
 0x335   : > { %v524_v35 = vpop.permute.xlu1 %523 }
 0x336   : > { %v529_v37 = vmul.f32 %v524_v35, %v504_v36 }
 0x338   : > { %533 = vrot.lane.b32.xlu0 %v529_v37, %s1049_s10 }
 0x39a   : > { %v536_v38 = vpop.permute.xlu1 %535 }
 0x39b   : > { %v540_v39 = vadd.f32 %v536_v38, %v377_v3 }
 0x39d   : > { %841 = vtanh.f32 %v540_v39 }
 0x3a3   : > { %v842_v40 = vpop.eup %841 }
 0x3a4   : > { %549 = vrot.lane.b32.xlu0 %v842_v40, %s1050_s26 }
 0x3aa   : > { %v534_v41 = vpop.permute.xlu0 %533 }
 0x3ab   : > { %v539_v42 = vadd.f32 %v534_v41, %v374_v9 }
 0x3ad   : > { %843 = vtanh.f32 %v539_v42 }
 0x3b3   : > { %v844_v43 = vpop.eup %843 }
 0x3b4   : > { %547 = vrot.lane.b32.xlu2 %v844_v43, %s1050_s26 }
 0x40e   : > { %v548_v45 = vpop.permute.xlu2 %547 }
 0x40f   : > { %v553_v47 = vmul.f32 %v548_v45, %v543_v44 }
 0x411   : > { %v557_v48 = vadd.f32 %v555_v46, %v553_v47 }
 0x413   : > { %561 = vrot.lane.b32.xlu1 %v557_v48, %s1050_s26 }
 0x416   : > { %v550_v50 = vpop.permute.xlu0 %549 }
 0x417   : > { %v554_v52 = vmul.f32 %v550_v50, %v544_v49 }
 0x419   : > { %v558_v53 = vadd.f32 %v556_v51, %v554_v52 }
 0x41b   : > { %563 = vrot.lane.b32.xlu2 %v558_v53, %s1050_s26 }
 0x475   : > { %v564_v54 = vpop.permute.xlu2 %563 }
 0x476   : > { %568 = vst.msk [vmem:[%s319_s28 + $0x8] sm:$0xff] %vm337_vm0, %v564_v54 }
 0x485   : > { %v562_v56 = vpop.permute.xlu1 %561 }
 0x486   : > { %567 = vst.msk [vmem:[%s319_s28] sm:$0xff] %vm337_vm0, %v562_v56 }
 0x487   : > { %992 = shalt.err (!%p989_p11)
}
 0x488   : > { %s1051_s27 = smov 128   ;;  %s1052_s12 = smov 8  }
 0x489   : > { %755 = dma.vmem_to_hbm [thread:$0]  (%p1155_p3), %s583_s30, 256, %s585_s8, %s570_s16, %s1051_s27, %s1051_s27, %s1052_s12  }
 0x48a PF: > { %s599_s13 = sand.u32 1, %s1031_s18   ;;  %p1345_p12 = scmp.ge.s32.totalorder %s1043_s21, 2 }
 0x48b   : > { %s600_s24 = scalar_lea.sflag [#allocation4], %s599_s13 }
 0x48c   : > { %p772_p13 = pnand %p1345_p12, %p1118_p6 }
 0x48e   : > { %p773_p0 = pneg %p772_p13 }
 0x490   : > { %1026 = dma.done.wait (%p773_p0), %s600_s24, 256  }
 0x491   : > { %1028 = vsyncadd (%p773_p0), %s600_s24, 4294967040  ;;  %s1346_s10 = sld [smem:[#allocation16_spill]]  ;;  %p22_p5 = scmp.ge.s32.totalorder %s1145_s14, 4  }
 0x492   : > { %s1347_s18 = smov %s1035_s19  ;;  %s1348_s19 = smov %s1039_s20 }
 0x493   : > { %s1350_s21 = smov %s1145_s14  ;;  %24 = sbr.rel (!%p22_p5) target bundleno = 12 (0xc), region = 106 }
 0x497   : > { %s1349_s20 = smov %s1346_s10 }
 0x498   :  { %606 = vsyncpa [#allocation3], 1 }
 0x499   :  { %608 = vsyncpa [#allocation3 + $0x1], 1 }
 0x49a   :  { %609 = vsyncpa [#allocation6], 1 }
 0x49b   :  { %611 = vsyncpa [#allocation6 + $0x1], 1 }
 0x49c   :  { %612 = vsyncpa [#allocation9], 1 }
 0x49d   :  { %613 = vsyncpa [#allocation4], 1 }
 0x49e   :  { %615 = vsyncpa [#allocation4 + $0x1], 1 }

</bundles_post_ra>
